<compile_context>
chip_gen: v5e
topology: v5e:2x2
jax: 0.10.0
libtpu: 0.0.40
codegen_flags: <defaults>
</compile_context>

<pallas_src>
import jax
import jax.numpy as jnp
from jax.experimental import pallas as pl
from jax.experimental.pallas import tpu as pltpu

EMBEDDING_SIZE = 64        # E: layer widths are 2E -> E/2 -> E/4 -> 3 -> E
HIDDEN3_PAD = 128          # 3-wide hidden layer padded to a full 128-lane slab


def _round_up(n, m):
    return (n + m - 1) // m * m


def mlp_kernel(x_ref, w1_ref, w2_ref, w3_ref, w4_ref, b_ref, out_ref):
    """Forward pass for one (TB, 2E) batch tile, everything VMEM-resident.

    x_ref  : (TB, 2E)   f32   flattened input tile (cast to bf16 in-kernel)
    w1_ref : (2E, E/2)  bf16
    w2_ref : (E/2, E/4) bf16
    w3_ref : (E/4, 128) bf16  (cols >= 3 are zero)
    w4_ref : (128, E)   bf16  (rows >= 3 are zero)
    b_ref  : (4, 128)   f32   packed biases [b1|b2|b3_pad|b4], zero-padded
    out_ref: (TB, E)    f32
    """
    E = EMBEDDING_SIZE
    b = b_ref[...]                                           # f32, tiny

    # Layer 1: (TB,2E) @ (2E,E/2); in-kernel bf16 cast of the f32 input tile.
    h = jnp.dot(x_ref[...].astype(jnp.bfloat16), w1_ref[...],
                preferred_element_type=jnp.float32)
    h = jnp.maximum(h + b[0:1, 0:E // 2], 0.0)

    # Layer 2: (TB,E/2) @ (E/2,E/4)
    h = jnp.dot(h.astype(jnp.bfloat16), w2_ref[...],
                preferred_element_type=jnp.float32)
    h = jnp.maximum(h + b[1:2, 0:E // 4], 0.0)

    # Layer 3 (padded 3 -> 128 lanes): (TB,E/4) @ (E/4,128)
    h = jnp.dot(h.astype(jnp.bfloat16), w3_ref[...],
                preferred_element_type=jnp.float32)
    h = jnp.maximum(h + b[2:3, :], 0.0)                      # padded lanes stay 0

    # Layer 4: (TB,128) @ (128,E); zero rows of w4 contribute nothing.
    h = jnp.dot(h.astype(jnp.bfloat16), w4_ref[...],
                preferred_element_type=jnp.float32)
    h = h + b[3:4, 0:E]

    # Residual: logits + x[:, :E], re-read from the VMEM-resident ref at the
    # point of use (keeps the big x tile's live range short), full f32.
    out_ref[...] = h + x_ref[:, 0:E]


def prepare_params(params):
    """One-time prep: bf16 weights, zero-pad the 3-wide layer, pack biases."""
    E = EMBEDDING_SIZE
    (w1, b1), (w2, b2), (w3, b3), (w4, b4) = params

    w3p = jnp.zeros((E // 4, HIDDEN3_PAD), jnp.float32).at[:, :3].set(w3)
    w4p = jnp.zeros((HIDDEN3_PAD, E), jnp.float32).at[:3, :].set(w4)

    b_all = jnp.zeros((4, 128), jnp.float32)
    b_all = (b_all.at[0, : E // 2].set(b1)
                  .at[1, : E // 4].set(b2)
                  .at[2, : 3].set(b3)
                  .at[3, : E].set(b4))

    return (w1.astype(jnp.bfloat16), w2.astype(jnp.bfloat16),
            w3p.astype(jnp.bfloat16), w4p.astype(jnp.bfloat16), b_all)


def neural_network_forward(x, prepared_params, *, tb=2048):
    """x: (B, 2, E) float32, prepared_params from prepare_params().
    Returns (B, E) float32."""
    E = EMBEDDING_SIZE
    B = x.shape[0]

    # nn.Flatten: (B,2,E) -> (B,2E). Merging contiguous trailing dims is a
    # bitcast reshape (no HBM pass). x stays f32; bf16 cast is in-kernel.
    x_flat = x.reshape(B, 2 * E)

    # Batch tile: large enough to amortize the ~0.35us/step overhead, capped so
    # the grid has >=2 steps when B allows (v7x two-TensorCore sharding),
    # multiple of 16 for sublane packing.
    TB = max(16, min(tb, _round_up(pl.cdiv(B, 2), 16)))
    grid = pl.cdiv(B, TB)          # ragged last block handled by Pallas

    w1b, w2b, w3pb, w4pb, b_all = prepared_params

    mm = (2 * E * (E // 2) + (E // 2) * (E // 4)
          + (E // 4) * HIDDEN3_PAD + HIDDEN3_PAD * E)
    flops = 2 * B * mm
    weight_bytes = 2 * mm + 4 * 128 * 4
    bytes_accessed = B * 2 * E * 4 + B * E * 4 + weight_bytes
    cost = pl.CostEstimate(flops=flops, transcendentals=0,
                           bytes_accessed=bytes_accessed)

    out = pl.pallas_call(
        mlp_kernel,
        out_shape=jax.ShapeDtypeStruct((B, E), jnp.float32),
        grid=(grid,),
        in_specs=[
            pl.BlockSpec((TB, 2 * E), lambda i: (i, 0)),            # x tile (f32)
            pl.BlockSpec((2 * E, E // 2), lambda i: (0, 0)),        # w1 (resident)
            pl.BlockSpec((E // 2, E // 4), lambda i: (0, 0)),       # w2
            pl.BlockSpec((E // 4, HIDDEN3_PAD), lambda i: (0, 0)),  # w3 padded
            pl.BlockSpec((HIDDEN3_PAD, E), lambda i: (0, 0)),       # w4 padded
            pl.BlockSpec((4, 128), lambda i: (0, 0)),               # packed biases
        ],
        out_specs=pl.BlockSpec((TB, E), lambda i: (i, 0)),
        compiler_params=pltpu.CompilerParams(
            dimension_semantics=("parallel",)),                     # megacore on v7x
        cost_estimate=cost,
    )(x_flat, w1b, w2b, w3pb, w4pb, b_all)

    return out


def init_params(key):
    """Deterministic init matching nn.Linear shapes; stored as [in, out], f32."""
    E = EMBEDDING_SIZE
    dims = [(2 * E, E // 2), (E // 2, E // 4), (E // 4, 3), (3, E)]
    params = []
    for i, (din, dout) in enumerate(dims):
        kw, kb = jax.random.split(jax.random.fold_in(key, i))
        bound = 1.0 / jnp.sqrt(din)
        w = jax.random.uniform(kw, (din, dout), jnp.float32, -bound, bound)
        b = jax.random.uniform(kb, (dout,), jnp.float32, -bound, bound)
        params.append((w, b))
    return params


def reference_forward(x, params):
    """Pure-JAX f32 reference identical to the PyTorch module."""
    B = x.shape[0]
    x_flat = x.reshape(B, -1)
    (w1, b1), (w2, b2), (w3, b3), (w4, b4) = params
    h = jnp.maximum(x_flat @ w1 + b1, 0.0)
    h = jnp.maximum(h @ w2 + b2, 0.0)
    h = jnp.maximum(h @ w3 + b3, 0.0)
    h = h @ w4 + b4
    return h + x_flat[:, : x_flat.shape[1] // 2]


if __name__ == "__main__":
    key = jax.random.PRNGKey(0)
    kx, kp = jax.random.split(key)
    params = init_params(kp)
    prepped = prepare_params(params)          # hoisted one-time param prep

    # Small single-tile case.
    B = 8
    x = jax.random.normal(kx, (B, 2, EMBEDDING_SIZE), jnp.float32)
    out = jax.block_until_ready(neural_network_forward(x, prepped))
    ref = reference_forward(x, params)
    assert out.shape == (B, EMBEDDING_SIZE)
    # Only the MXU feeds are bf16 (residual is f32) -> compare at bf16 tolerance.
    assert jnp.allclose(out, ref, atol=5e-2, rtol=5e-2), "mismatch vs reference"

    # Multi-tile case with B not divisible by the tile
    # (exercises ragged last block + multi-step grid, no padding pass).
    B2 = 40
    x2 = jax.random.normal(jax.random.fold_in(kx, 1),
                           (B2, 2, EMBEDDING_SIZE), jnp.float32)
    out2 = jax.block_until_ready(neural_network_forward(x2, prepped, tb=16))
    ref2 = reference_forward(x2, params)
    assert out2.shape == (B2, EMBEDDING_SIZE)
    assert jnp.allclose(out2, ref2, atol=5e-2, rtol=5e-2), "mismatch (tiled)"

    print("KERNEL_OK")
</pallas_src>

<mosaic_0001>
module attributes {stable_mosaic.version = 11 : i64} {
  func.func @mlp_kernel(%arg0: i32, %arg1: memref<16x128xf32, #tpu.memory_space<vmem>>, %arg2: memref<128x32xbf16, #tpu.memory_space<vmem>>, %arg3: memref<32x16xbf16, #tpu.memory_space<vmem>>, %arg4: memref<16x128xbf16, #tpu.memory_space<vmem>>, %arg5: memref<128x64xbf16, #tpu.memory_space<vmem>>, %arg6: memref<4x128xf32, #tpu.memory_space<vmem>>, %arg7: memref<16x64xf32, #tpu.memory_space<vmem>>) attributes {dimension_semantics = [#tpu.dimension_semantics<parallel>], iteration_bounds = array<i64: 1>, scalar_prefetch = 0 : i64, scratch_operands = 0 : i64, tpu.core_type = #tpu.core_type<tc>, window_params = [{transform_indices = @transform_0, window_bounds = array<i64: 16, 128>}, {pipeline_mode = #tpu.pipeline_mode<synchronous>, transform_indices = @transform_1, window_bounds = array<i64: 128, 32>}, {pipeline_mode = #tpu.pipeline_mode<synchronous>, transform_indices = @transform_2, window_bounds = array<i64: 32, 16>}, {pipeline_mode = #tpu.pipeline_mode<synchronous>, transform_indices = @transform_3, window_bounds = array<i64: 16, 128>}, {pipeline_mode = #tpu.pipeline_mode<synchronous>, transform_indices = @transform_4, window_bounds = array<i64: 128, 64>}, {pipeline_mode = #tpu.pipeline_mode<synchronous>, transform_indices = @transform_5, window_bounds = array<i64: 4, 128>}, {transform_indices = @transform_6, window_bounds = array<i64: 16, 64>}]} {
    %c0 = arith.constant 0 : index
    %c0_0 = arith.constant 0 : index
    %0 = vector.load %arg6[%c0, %c0_0] : memref<4x128xf32, #tpu.memory_space<vmem>>, vector<4x128xf32>
    %c0_1 = arith.constant 0 : index
    %c0_2 = arith.constant 0 : index
    %1 = vector.load %arg1[%c0_1, %c0_2] : memref<16x128xf32, #tpu.memory_space<vmem>>, vector<16x128xf32>
    %2 = arith.truncf %1 : vector<16x128xf32> to vector<16x128xbf16>
    %c0_3 = arith.constant 0 : index
    %c0_4 = arith.constant 0 : index
    %3 = vector.load %arg2[%c0_3, %c0_4] : memref<128x32xbf16, #tpu.memory_space<vmem>>, vector<128x32xbf16>
    %cst = arith.constant dense<0.000000e+00> : vector<16x32xf32>
    %4 = tpu.matmul %2, %3, %cst {dimension_numbers = #tpu.dot_dimension_numbers<[1], [0], [0], [1], [0, 0, 1, 1], [], []>} : vector<16x128xbf16>, vector<128x32xbf16>, vector<16x32xf32> -> vector<16x32xf32>
    %5 = vector.extract_strided_slice %0 {offsets = [0, 0], sizes = [1, 32], strides = [1, 1]} : vector<4x128xf32> to vector<1x32xf32>
    %6 = vector.broadcast %5 : vector<1x32xf32> to vector<16x32xf32>
    %7 = arith.addf %4, %6 : vector<16x32xf32>
    %cst_5 = arith.constant 0.000000e+00 : f32
    %8 = vector.broadcast %cst_5 : f32 to vector<16x32xf32>
    %9 = arith.maximumf %7, %8 : vector<16x32xf32>
    %10 = arith.truncf %9 : vector<16x32xf32> to vector<16x32xbf16>
    %c0_6 = arith.constant 0 : index
    %c0_7 = arith.constant 0 : index
    %11 = vector.load %arg3[%c0_6, %c0_7] : memref<32x16xbf16, #tpu.memory_space<vmem>>, vector<32x16xbf16>
    %cst_8 = arith.constant dense<0.000000e+00> : vector<16x16xf32>
    %12 = tpu.matmul %10, %11, %cst_8 {dimension_numbers = #tpu.dot_dimension_numbers<[1], [0], [0], [1], [0, 0, 1, 1], [], []>} : vector<16x32xbf16>, vector<32x16xbf16>, vector<16x16xf32> -> vector<16x16xf32>
    %13 = vector.extract_strided_slice %0 {offsets = [1, 0], sizes = [1, 16], strides = [1, 1]} : vector<4x128xf32> to vector<1x16xf32>
    %14 = vector.broadcast %13 : vector<1x16xf32> to vector<16x16xf32>
    %15 = arith.addf %12, %14 : vector<16x16xf32>
    %cst_9 = arith.constant 0.000000e+00 : f32
    %16 = vector.broadcast %cst_9 : f32 to vector<16x16xf32>
    %17 = arith.maximumf %15, %16 : vector<16x16xf32>
    %18 = arith.truncf %17 : vector<16x16xf32> to vector<16x16xbf16>
    %c0_10 = arith.constant 0 : index
    %c0_11 = arith.constant 0 : index
    %19 = vector.load %arg4[%c0_10, %c0_11] : memref<16x128xbf16, #tpu.memory_space<vmem>>, vector<16x128xbf16>
    %cst_12 = arith.constant dense<0.000000e+00> : vector<16x128xf32>
    %20 = tpu.matmul %18, %19, %cst_12 {dimension_numbers = #tpu.dot_dimension_numbers<[1], [0], [0], [1], [0, 0, 1, 1], [], []>} : vector<16x16xbf16>, vector<16x128xbf16>, vector<16x128xf32> -> vector<16x128xf32>
    %21 = vector.extract_strided_slice %0 {offsets = [2, 0], sizes = [1, 128], strides = [1, 1]} : vector<4x128xf32> to vector<1x128xf32>
    %22 = vector.broadcast %21 : vector<1x128xf32> to vector<16x128xf32>
    %23 = arith.addf %20, %22 : vector<16x128xf32>
    %cst_13 = arith.constant 0.000000e+00 : f32
    %24 = vector.broadcast %cst_13 : f32 to vector<16x128xf32>
    %25 = arith.maximumf %23, %24 : vector<16x128xf32>
    %26 = arith.truncf %25 : vector<16x128xf32> to vector<16x128xbf16>
    %c0_14 = arith.constant 0 : index
    %c0_15 = arith.constant 0 : index
    %27 = vector.load %arg5[%c0_14, %c0_15] : memref<128x64xbf16, #tpu.memory_space<vmem>>, vector<128x64xbf16>
    %cst_16 = arith.constant dense<0.000000e+00> : vector<16x64xf32>
    %28 = tpu.matmul %26, %27, %cst_16 {dimension_numbers = #tpu.dot_dimension_numbers<[1], [0], [0], [1], [0, 0, 1, 1], [], []>} : vector<16x128xbf16>, vector<128x64xbf16>, vector<16x64xf32> -> vector<16x64xf32>
    %29 = vector.extract_strided_slice %0 {offsets = [3, 0], sizes = [1, 64], strides = [1, 1]} : vector<4x128xf32> to vector<1x64xf32>
    %30 = vector.broadcast %29 : vector<1x64xf32> to vector<16x64xf32>
    %31 = arith.addf %28, %30 : vector<16x64xf32>
    %c0_17 = arith.constant 0 : index
    %c0_18 = arith.constant 0 : index
    %32 = vector.load %arg1[%c0_17, %c0_18] : memref<16x128xf32, #tpu.memory_space<vmem>>, vector<16x64xf32>
    %33 = arith.addf %31, %32 : vector<16x64xf32>
    %c0_19 = arith.constant 0 : index
    %c0_20 = arith.constant 0 : index
    %34 = vector.load %arg7[%c0_19, %c0_20] : memref<16x64xf32, #tpu.memory_space<vmem>>, vector<16x64xf32>
    tpu.vector_store %arg7[%c0_19, %c0_20], %33 {strides = array<i32>} : memref<16x64xf32, #tpu.memory_space<vmem>>, vector<16x64xf32>,
    return
  }
  func.func @transform_0(%arg0: i32) -> (i32, i32) {
    %c0_i32 = arith.constant 0 : i32
    %c0_i32_0 = arith.constant 0 : i32
    return %arg0, %c0_i32 : i32, i32
  }
  func.func @transform_1(%arg0: i32) -> (i32, i32) {
    %c0_i32 = arith.constant 0 : i32
    %c0_i32_0 = arith.constant 0 : i32
    %c0_i32_1 = arith.constant 0 : i32
    return %c0_i32, %c0_i32_0 : i32, i32
  }
  func.func @transform_2(%arg0: i32) -> (i32, i32) {
    %c0_i32 = arith.constant 0 : i32
    %c0_i32_0 = arith.constant 0 : i32
    %c0_i32_1 = arith.constant 0 : i32
    return %c0_i32, %c0_i32_0 : i32, i32
  }
  func.func @transform_3(%arg0: i32) -> (i32, i32) {
    %c0_i32 = arith.constant 0 : i32
    %c0_i32_0 = arith.constant 0 : i32
    %c0_i32_1 = arith.constant 0 : i32
    return %c0_i32, %c0_i32_0 : i32, i32
  }
  func.func @transform_4(%arg0: i32) -> (i32, i32) {
    %c0_i32 = arith.constant 0 : i32
    %c0_i32_0 = arith.constant 0 : i32
    %c0_i32_1 = arith.constant 0 : i32
    return %c0_i32, %c0_i32_0 : i32, i32
  }
  func.func @transform_5(%arg0: i32) -> (i32, i32) {
    %c0_i32 = arith.constant 0 : i32
    %c0_i32_0 = arith.constant 0 : i32
    %c0_i32_1 = arith.constant 0 : i32
    return %c0_i32, %c0_i32_0 : i32, i32
  }
  func.func @transform_6(%arg0: i32) -> (i32, i32) {
    %c0_i32 = arith.constant 0 : i32
    %c0_i32_0 = arith.constant 0 : i32
    return %arg0, %c0_i32 : i32, i32
  }
}

</mosaic_0001>

<bundles_post_ra>
// kernel: tpu_custom_call.1
= control target key start
LH: loop header
LB: loop body
LE: loop exit
PB: predicated region body
PF: predicated region fallthrough
CT: control target
= control target key end

     0   :  { %11 = vsyncpa [#allocation3], 0  ;;  %vm128_vm0 = vcmask 261120   ;;  %vm158_vm1 = vcmask 130048   ;;  %vm260_vm2 = vcmask 523264   ;;  %s518_s0 = inlined_call_operand.vmem [shape: f32[8,128], index: 0, kind: input, shape index: {}]   ;;  %s519_s1 = inlined_call_operand.vmem [shape: bf16[128,32], index: 1, kind: input, shape index: {}]   ;;  %s520_s2 = inlined_call_operand.vmem [shape: bf16[32,16], index: 2, kind: input, shape index: {}]   ;;  %s521_s3 = inlined_call_operand.vmem [shape: bf16[16,128], index: 3, kind: input, shape index: {}]   ;;  %s522_s4 = inlined_call_operand.vmem [shape: bf16[128,64], index: 4, kind: input, shape index: {}]   ;;  %s523_s5 = inlined_call_operand.vmem [shape: f32[4,128], index: 5, kind: input, shape index: {}]   ;;  %s524_s6 = inlined_call_operand.hbm [shape: f32[8,64], index: 6, kind: output, shape index: {}]  }
   0x1   :  { %v366_v0 = vld [vmem:[%s519_s1 + $0x38] sm:$0xff]  ;;  %v365_v1 = vld [vmem:[%s519_s1 + $0x30] sm:$0xff]  ;;  %v364_v2 = vld [vmem:[%s519_s1 + $0x28] sm:$0xff] }
   0x2   :  { %94 = vmatpush.bf16.msra.mxu0 %v366_v0  ;;  %v363_v3 = vld [vmem:[%s519_s1 + $0x20] sm:$0xff]  ;;  %v362_v4 = vld [vmem:[%s519_s1 + $0x18] sm:$0xff]  ;;  %v361_v5 = vld [vmem:[%s519_s1 + $0x10] sm:$0xff] }
   0x3   :  { %v360_v6 = vld [vmem:[%s519_s1 + $0x8] sm:$0xff]  ;;  %v359_v7 = vld [vmem:[%s519_s1] sm:$0xff]  ;;  %v377_v23 = vld [vmem:[%s522_s4 + $0x38] sm:$0xff] }
   0x4   :  { %v26_v8 = vld [vmem:[%s518_s0] sm:$0xff]  ;;  %v475_v9 = vld [vmem:[%s518_s0 + $0x8] sm:$0xff]  ;;  %244 = vmatpush.bf16.msra.mxu3 %v377_v23  ;;  %v376_v24 = vld [vmem:[%s522_s4 + $0x30] sm:$0xff] }
   0x5   :  { %v28_v10 = vpack.c.bf16 %v475_v9, %v26_v8  ;;  %v368_v11 = vld [vmem:[%s520_s2 + $0x8] sm:$0xff]  ;;  %v367_v12 = vld [vmem:[%s520_s2] sm:$0xff]  ;;  %v373_v35 = vld [vmem:[%s522_s4 + $0x18] sm:$0xff] }
   0x6   :  { %95 = vmatpush.bf16.msra.mxu0 %v365_v1  ;;  %138 = vmatpush.bf16.msra.mxu1 %v368_v11  ;;  %v25_v13 = vld [vmem:[%s523_s5] sm:$0xf]  ;;  %v375_v25 = vld [vmem:[%s522_s4 + $0x28] sm:$0xff]  ;;  %v372_v36 = vld [vmem:[%s522_s4 + $0x10] sm:$0xff] }
   0x7   :  { %v45_v15 = vperm.slane %v25_v13, 0  ;;  %v369_v22 = vld [vmem:[%s521_s3] sm:$0xff]  ;;  %v115_v28 = vperm.slane %v25_v13, 1  ;;  %v371_v37 = vld [vmem:[%s522_s4 + $0x8] sm:$0xff]  ;;  %v151_v40 = vperm.slane %v25_v13, 2  ;;  %v195_v47 = vperm.slane %v25_v13, 3 }
   0x8   :  { %169 = vmatpush.bf16.msra.mxu2 %v369_v22  ;;  %245 = vmatpush.bf16.msra.mxu3 %v376_v24  ;;  %v374_v26 = vld [vmem:[%s522_s4 + $0x20] sm:$0xff] }
   0x9   :  { %v370_v38 = vld [vmem:[%s522_s4] sm:$0xff] }
   0xa   :  { %96 = vmatpush.bf16.msra.mxu0 %v364_v2  ;;  %139 = vmatpush.bf16.msra.mxu1 %v367_v12 }
   0xc   :  { %246 = vmatpush.bf16.msra.mxu3 %v375_v25 }
   0xe   :  { %97 = vmatpush.bf16.msra.mxu0 %v363_v3 }
  0x10   :  { %247 = vmatpush.bf16.msra.mxu3 %v374_v26 }
  0x12   :  { %98 = vmatpush.bf16.msra.mxu0 %v362_v4 }
  0x14   :  { %248 = vmatpush.bf16.msra.mxu3 %v373_v35 }
  0x16   :  { %99 = vmatpush.bf16.msra.mxu0 %v361_v5 }
  0x18   :  { %249 = vmatpush.bf16.msra.mxu3 %v372_v36 }
  0x1a   :  { %100 = vmatpush.bf16.msra.mxu0 %v360_v6 }
  0x1c   :  { %250 = vmatpush.bf16.msra.mxu3 %v371_v37 }
  0x1e   :  { %101 = vmatpush.bf16.msra.mxu0 %v359_v7 }
  0x20   :  { %251 = vmatpush.bf16.msra.mxu3 %v370_v38 }
  0x21   :  { %102 = vmatmul.bf16.vlgmr.msra.gmra.mxu0 %v28_v10 }
  0x9e   :  { %v103_v14 = vpop.f32.mrf.mxu0 }
  0x9f   :  { %v104_v16 = vadd.f32 %v103_v14, %v45_v15 }
  0xa1   :  { %v108_v19 = vmax.f32 %v104_v16, 0.0 }
  0xa6   :  { %v105_v17 = vpop.f32.mrf.mxu0 }
  0xa7   :  { %v106_v18 = vadd.f32 %v105_v17, %v45_v15 }
  0xa9   :  { %v109_v20 = vmax.f32 %v106_v18, 0.0 }
  0xab   :  { %v110_v21 = vpack.c.bf16 %v109_v20, %v108_v19 }
  0xad   :  { %321 = vmatmul.msk.bf16.vlgmr.msra.gmra.mxu1 %vm128_vm0, %v110_v21 }
 0x12a   :  { %v141_v27 = vpop.f32.mrf.mxu1 }
 0x12b   :  { %v142_v29 = vadd.f32 %v141_v27, %v115_v28 }
 0x12d   :  { %v146_v32 = vmax.f32 %v142_v29, 0.0 }
 0x132   :  { %v143_v30 = vpop.f32.mrf.mxu1 }
 0x133   :  { %v144_v31 = vadd.f32 %v143_v30, %v115_v28 }
 0x135   :  { %v147_v33 = vmax.f32 %v144_v31, 0.0 }
 0x137   :  { %v148_v34 = vpack.c.bf16 %v147_v33, %v146_v32 }
 0x139   :  { %326 = vmatmul.msk.bf16.vlgmr.msra.gmra.mxu2 %vm158_vm1, %v148_v34 }
 0x1bc   :  { %v171_v39 = vpop.f32.mrf.mxu2 }
 0x1bd   :  { %v172_v41 = vadd.f32 %v171_v39, %v151_v40 }
 0x1bf   :  { %v176_v44 = vmax.f32 %v172_v41, 0.0 }
 0x1c4   :  { %v173_v42 = vpop.f32.mrf.mxu2 }
 0x1c5   :  { %v174_v43 = vadd.f32 %v173_v42, %v151_v40 }
 0x1c7   :  { %v177_v45 = vmax.f32 %v174_v43, 0.0 }
 0x1c9   :  { %v178_v46 = vpack.c.bf16 %v177_v45, %v176_v44 }
 0x1cb   :  { %252 = vmatmul.bf16.vlgmr.msra.gmra.mxu3 %v178_v46 }
 0x24e   :  { %v253_v48 = vpop.f32.mrf.mxu3 }
 0x24f   :  { %v254_v49 = vadd.f32 %v253_v48, %v195_v47 }
 0x251   :  { %v258_v50 = vadd.f32 %v254_v49, %v26_v8 }
 0x253   :  { %261 = vst.msk [vmem:[#allocation2] sm:$0xff] %vm260_vm2, %v258_v50 }
 0x256   :  { %v255_v51 = vpop.f32.mrf.mxu3 }
 0x257   :  { %v256_v52 = vadd.f32 %v255_v51, %v195_v47 }
 0x259   :  { %v259_v53 = vadd.f32 %v256_v52, %v475_v9 }
 0x25b   :  { %262 = vst.msk [vmem:[#allocation2 + $0x8] sm:$0xff] %vm260_vm2, %v259_v53 }
 0x25c   :  { %266 = vsyncadd [#allocation3], 128  ;;  %s269_s13 = sshll.u32 %s524_s6, 4  ;;  %s407_s14 = smov [#allocation2]   ;;  %s270_s13 = int_to_ptr.hbm [resolvable:$true] %s269_s13 }
 0x25d   :  { %s267_s15 = sshll.u32 %s407_s14, 4  ;;  %s408_s16 = smov 128   ;;  %s268_s15 = int_to_ptr.vmem [resolvable:$true] %s267_s15 }
 0x25e   :  { %s409_s17 = smov 8  }
 0x25f   :  { %275 = dma.vmem_to_hbm [thread:$0]  %s268_s15, 128, %s270_s13, [#allocation3], %s408_s16, %s408_s16, %s409_s17  }
 0x260   :  { %405 = dma.done.wait [#allocation3], 256  }
 0x261   :  { %406 = vsyncadd [#allocation3], 4294967040 }
 0x262   :  { %280 = vsyncpa [#allocation3], 1 }

</bundles_post_ra>
